<compile_context>
chip_gen: v7x
topology: tpu7x:2x2x1
jax: 0.10.0
libtpu: 0.0.40
codegen_flags: <defaults>
</compile_context>

<pallas_src>
import functools
import math

import numpy as np
import jax
import jax.numpy as jnp
from jax.experimental import pallas as pl
from jax.experimental.pallas import tpu as pltpu


def _round_up(n, m):
    return ((n + m - 1) // m) * m


def _pick_mc_block(mc, n_rf):
    """Largest divisor of mc (capped at 8, packed lane width <= 512) that keeps the
    grid length even and >= 2, so the 'parallel' mc axis can shard across v7x's two
    TensorCores.  Falls back to 1 (serial grid of length mc) otherwise."""
    best = 1
    for d in range(1, min(mc, 8) + 1):
        if mc % d:
            continue
        g = mc // d
        if g >= 2 and g % 2 == 0 and d * n_rf <= 512:
            best = d
    return best


def _rff_kernel(x_ref, om_mu_ref, om_sig_ref, om_eps_ref,
                w_mu_ref, w_sig_ref, w_eps_ref, lw_ref, lb_ref, out_ref,
                *, bz, seq, n_rf, mc_block):
    # VMEM shapes:
    #   x_ref:      (bz*S, D)                  f32, resident (constant index_map)
    #   om_mu_ref:  (D, mc_block*n_rf)         omega_mu tiled mc_block times along lanes
    #   om_sig_ref: (D, mc_block*n_rf)         exp(omega_logsigma/2), tiled likewise
    #   om_eps_ref: (1, D, mc_block*n_rf)      this block's eps, lane-packed (unpadded)
    #   w_mu_ref:   (2*n_rf, out)              rows [0:n_rf] -> cos, [n_rf:2n_rf] -> sin
    #   w_sig_ref:  (2*n_rf, out)
    #   w_eps_ref:  (mc_block, 2*n_rf, out)
    #   lw_ref:     (out, nc_p)                classifier weight, scale/(sqrt(N_RF)*S) folded in
    #   lb_ref:     (1, nc_p)
    #   out_ref:    (1, mc_block*bz, nc_p)     lane-dense output slab
    x = x_ref[...]

    # Reparameterized omegas for the whole MC block, packed along the lane axis
    # (VPU only; the (mc, D, n_rf) omega_q never touches HBM).
    omega_all = om_mu_ref[...] + om_sig_ref[...] * om_eps_ref[0]      # (D, mc_block*n_rf)

    # One wide MXU matmul covering all mc_block samples.
    z_all = jnp.dot(x, omega_all, preferred_element_type=jnp.float32)  # (bz*S, mc_block*n_rf)

    # Pool over the sequence BEFORE the W matmul (valid by linearity; 1/S and the
    # RFF scale are folded into lw).  With seq % 8 == 0 the reshape is a free
    # sublane-split view (no relayout copy).
    w_lanes = mc_block * n_rf
    cos_p = jnp.sum(jnp.cos(z_all).reshape(bz, seq, w_lanes), axis=1)  # (bz, mc_block*n_rf)
    sin_p = jnp.sum(jnp.sin(z_all).reshape(bz, seq, w_lanes), axis=1)  # (bz, mc_block*n_rf)

    w_mu = w_mu_ref[...]
    w_sig = w_sig_ref[...]

    # Tiny per-sample W matmuls on pooled (bz-row) data only.  Static unroll is
    # fine here: post-pool operands are a handful of vregs (mc_block is capped).
    fy_rows = []
    for j in range(mc_block):
        w_q = w_mu + w_sig * w_eps_ref[j]                              # (2*n_rf, out)
        pc = cos_p[:, j * n_rf:(j + 1) * n_rf]                         # (bz, n_rf)
        ps = sin_p[:, j * n_rf:(j + 1) * n_rf]                         # (bz, n_rf)
        fy_rows.append(
            jnp.dot(pc, w_q[:n_rf, :], preferred_element_type=jnp.float32)
            + jnp.dot(ps, w_q[n_rf:, :], preferred_element_type=jnp.float32))  # (bz, out)
    fy_all = jnp.concatenate(fy_rows, axis=0)                          # (mc_block*bz, out)

    # Single batched classifier matmul + one bias broadcast for the whole MC block.
    y = jnp.dot(fy_all, lw_ref[...], preferred_element_type=jnp.float32) + lb_ref[...]
    out_ref[0] = y.astype(out_ref.dtype)                               # (mc_block*bz, nc_p)


def _pack_params(params, *, mc, n_rf, seq, mc_block):
    """Parameter-side preprocessing (lane packing / tiling / scale folding).
    Depends only on params + static shapes, so it can be hoisted and run once per
    parameter set.  No padded eps is ever materialized: the only data movement is
    a single transpose-pass over omega_eps to pack mc_block samples along lanes."""
    f32 = jnp.float32
    in_dim = params["omega_mu"].shape[0]
    out_dim = params["w_mu"].shape[1]
    num_classes = params["lin_w_t"].shape[1]
    n_blocks = mc // mc_block
    nc_p = _round_up(num_classes, 128)

    # omega: shared mu / exp(logsigma/2) tiled mc_block times along lanes so the
    # whole MC block forms one MXU RHS; per-sample eps packed the same way.
    om_mu_t = jnp.tile(params["omega_mu"].astype(f32), (1, mc_block))
    om_sig_t = jnp.tile(jnp.exp(params["omega_logsigma"].astype(f32) * 0.5), (1, mc_block))
    om_eps_p = (params["omega_eps"].astype(f32)
                .reshape(n_blocks, mc_block, in_dim, n_rf)
                .transpose(0, 2, 1, 3)
                .reshape(n_blocks, in_dim, mc_block * n_rf))

    # W: completely unpadded; rows [0:n_rf] multiply cos, rows [n_rf:2n_rf] sin.
    w_mu = params["w_mu"].astype(f32)
    w_sig = jnp.exp(params["w_logsigma"].astype(f32) * 0.5)
    w_eps = params["w_eps"].astype(f32)

    # classifier: fold (kernel_scale * exp(log_scale/2) / sqrt(N_RF)) and the 1/S
    # mean into the weight (everything downstream of cos/sin is linear); pad the
    # class axis to 128 lanes for an unmasked, lane-dense output store.
    kernel_scale = 1.0  # rbf
    scale = kernel_scale * jnp.exp(params["log_scale"].astype(f32) * 0.5) / jnp.sqrt(
        jnp.float32(n_rf))
    lw = jnp.zeros((out_dim, nc_p), f32).at[:, :num_classes].set(
        params["lin_w_t"].astype(f32))
    lw = lw * (scale / jnp.float32(seq))
    lb = jnp.zeros((1, nc_p), f32).at[0, :num_classes].set(params["lin_b"].astype(f32))

    return om_mu_t, om_sig_t, om_eps_p, w_mu, w_sig, w_eps, lw, lb, nc_p


def rff_model_forward(x, params, *, mc, n_rf, mc_block=None):
    """x: (bz, S, in_dim) f32.  Returns (mc, bz, num_classes) f32."""
    f32 = jnp.float32
    bz, seq, in_dim = x.shape
    out_dim = params["w_mu"].shape[1]
    num_classes = params["lin_w_t"].shape[1]

    if mc_block is None:
        mc_block = _pick_mc_block(mc, n_rf)
    assert mc % mc_block == 0
    n_blocks = mc // mc_block

    x_flat = x.reshape(bz * seq, in_dim).astype(f32)
    (om_mu_t, om_sig_t, om_eps_p, w_mu, w_sig, w_eps, lw, lb, nc_p) = _pack_params(
        params, mc=mc, n_rf=n_rf, seq=seq, mc_block=mc_block)

    grid_spec = pltpu.PrefetchScalarGridSpec(
        num_scalar_prefetch=0,
        grid=(n_blocks,),
        in_specs=[
            pl.BlockSpec((bz * seq, in_dim), lambda m: (0, 0)),                # x (resident)
            pl.BlockSpec((in_dim, mc_block * n_rf), lambda m: (0, 0)),         # omega_mu (tiled)
            pl.BlockSpec((in_dim, mc_block * n_rf), lambda m: (0, 0)),         # omega_sigma (tiled)
            pl.BlockSpec((1, in_dim, mc_block * n_rf), lambda m: (m, 0, 0)),   # omega_eps (packed)
            pl.BlockSpec((2 * n_rf, out_dim), lambda m: (0, 0)),               # w_mu
            pl.BlockSpec((2 * n_rf, out_dim), lambda m: (0, 0)),               # w_sigma
            pl.BlockSpec((mc_block, 2 * n_rf, out_dim), lambda m: (m, 0, 0)),  # w_eps
            pl.BlockSpec((out_dim, nc_p), lambda m: (0, 0)),                   # lin_w (scale folded)
            pl.BlockSpec((1, nc_p), lambda m: (0, 0)),                         # lin_b
        ],
        out_specs=pl.BlockSpec((1, mc_block * bz, nc_p), lambda m: (m, 0, 0)),
    )

    kernel = functools.partial(_rff_kernel, bz=bz, seq=seq, n_rf=n_rf, mc_block=mc_block)

    out = pl.pallas_call(
        kernel,
        out_shape=jax.ShapeDtypeStruct((n_blocks, mc_block * bz, nc_p), f32),
        grid_spec=grid_spec,
        compiler_params=pltpu.CompilerParams(
            dimension_semantics=("parallel",),
            vmem_limit_bytes=32 * 1024 * 1024),   # explicit; safe on v5e/v6e/v7x
    )(x_flat, om_mu_t, om_sig_t, om_eps_p, w_mu, w_sig, w_eps, lw, lb)

    # (n_blocks, mc_block*bz, nc_p): rows inside a block are sample-major / batch-minor,
    # matching the in-kernel concatenation, so a plain reshape recovers (mc, bz, nc_p).
    return out.reshape(mc, bz, nc_p)[:, :, :num_classes]


def reference_forward(x, params, *, mc, n_rf):
    """Pure-JAX mirror of the PyTorch RFFModel forward (rbf, 1 layer, global_pool)."""
    bz = x.shape[0]
    omega_var = jnp.exp(params["omega_logsigma"] * 0.5)
    omega_q = params["omega_mu"][None] + omega_var[None] * params["omega_eps"]   # (mc, D, N_RF)
    omega_q = omega_q[:, None]                                                   # (mc, 1, D, N_RF)
    x_rep = jnp.broadcast_to(x[None], (mc,) + x.shape)                           # F0 repeat
    z = jnp.matmul(x_rep, omega_q)                                               # (mc, bz, S, N_RF)
    scale = jnp.exp(params["log_scale"] * 0.5)
    phi = jnp.concatenate([jnp.cos(z), jnp.sin(z)], axis=-1)
    phi = phi * (1.0 * scale / jnp.sqrt(jnp.float32(n_rf)))
    w_var = jnp.exp(params["w_logsigma"] * 0.5)
    w_q = (params["w_mu"][None] + w_var[None] * params["w_eps"])[:, None]        # (mc, 1, 2N, out)
    fy = jnp.matmul(phi, w_q)                                                    # (mc, bz, S, out)
    pooled = fy.reshape(mc, bz, -1, fy.shape[-1]).mean(axis=2)                   # (mc, bz, out)
    return pooled @ params["lin_w_t"] + params["lin_b"][None, None, :]


if __name__ == "__main__":
    # small shapes consistent with the module's forward
    mc, bz, seq = 4, 2, 8
    in_dim, n_rf, num_classes = 32, 16, 1
    out_dim = n_rf  # RFFBlock(kernel, True, mc, in_dims, N_RF, N_RF)

    key = jax.random.PRNGKey(0)
    k_x, k_om, k_oe, k_wm, k_we, k_lw, k_lb = jax.random.split(key, 7)

    x = jax.random.normal(k_x, (bz, seq, in_dim), dtype=jnp.float32)

    params = {
        # RFFLayer (mu set to small random values, as if trained, so the mu terms
        # are actually exercised by the check; module init would be zeros)
        "omega_mu": 0.1 * jax.random.normal(k_om, (in_dim, n_rf), jnp.float32),
        "omega_logsigma": jnp.ones((in_dim, n_rf), jnp.float32),            # ll_scale * ones
        "omega_eps": jax.random.normal(k_oe, (mc, in_dim, n_rf), jnp.float32),
        "log_scale": jnp.array(0.5, jnp.float32),
        # RFFLinearLayer (rbf -> feature dim 2*N_RF)
        "w_mu": 0.1 * jax.random.normal(k_wm, (2 * n_rf, out_dim), jnp.float32),
        "w_logsigma": jnp.ones((2 * n_rf, out_dim), jnp.float32),
        "w_eps": jax.random.normal(k_we, (mc, 2 * n_rf, out_dim), jnp.float32),
        # final nn.Linear(N_RF, num_classes), stored pre-transposed
        "lin_w_t": jax.random.normal(k_lw, (out_dim, num_classes), jnp.float32)
                   * (1.0 / math.sqrt(out_dim)),
        "lin_b": jax.random.normal(k_lb, (num_classes,), jnp.float32) * 0.1,
    }

    out = rff_model_forward(x, params, mc=mc, n_rf=n_rf)
    out = jax.block_until_ready(out)

    ref = reference_forward(x, params, mc=mc, n_rf=n_rf)
    np.testing.assert_allclose(np.asarray(out), np.asarray(ref), rtol=1e-4, atol=2e-5)

    print("KERNEL_OK")
</pallas_src>

<mosaic_0001>
module attributes {stable_mosaic.version = 11 : i64} {
  func.func @_rff_kernel(%arg0: i32, %arg1: memref<16x32xf32, #tpu.memory_space<vmem>>, %arg2: memref<32x32xf32, #tpu.memory_space<vmem>>, %arg3: memref<32x32xf32, #tpu.memory_space<vmem>>, %arg4: memref<1x32x32xf32, #tpu.memory_space<vmem>>, %arg5: memref<32x16xf32, #tpu.memory_space<vmem>>, %arg6: memref<32x16xf32, #tpu.memory_space<vmem>>, %arg7: memref<2x32x16xf32, #tpu.memory_space<vmem>>, %arg8: memref<16x128xf32, #tpu.memory_space<vmem>>, %arg9: memref<1x128xf32, #tpu.memory_space<vmem>>, %arg10: memref<1x4x128xf32, #tpu.memory_space<vmem>>) attributes {dimension_semantics = [#tpu.dimension_semantics<parallel>], iteration_bounds = array<i64: 2>, scalar_prefetch = 0 : i64, scratch_operands = 0 : i64, tpu.core_type = #tpu.core_type<tc>, window_params = [{pipeline_mode = #tpu.pipeline_mode<synchronous>, transform_indices = @transform_0, window_bounds = array<i64: 16, 32>}, {pipeline_mode = #tpu.pipeline_mode<synchronous>, transform_indices = @transform_1, window_bounds = array<i64: 32, 32>}, {pipeline_mode = #tpu.pipeline_mode<synchronous>, transform_indices = @transform_2, window_bounds = array<i64: 32, 32>}, {transform_indices = @transform_3, window_bounds = array<i64: 1, 32, 32>}, {pipeline_mode = #tpu.pipeline_mode<synchronous>, transform_indices = @transform_4, window_bounds = array<i64: 32, 16>}, {pipeline_mode = #tpu.pipeline_mode<synchronous>, transform_indices = @transform_5, window_bounds = array<i64: 32, 16>}, {transform_indices = @transform_6, window_bounds = array<i64: 2, 32, 16>}, {pipeline_mode = #tpu.pipeline_mode<synchronous>, transform_indices = @transform_7, window_bounds = array<i64: 16, 128>}, {pipeline_mode = #tpu.pipeline_mode<synchronous>, transform_indices = @transform_8, window_bounds = array<i64: 1, 128>}, {transform_indices = @transform_9, window_bounds = array<i64: 1, 4, 128>}]} {
    %c0 = arith.constant 0 : index
    %c0_0 = arith.constant 0 : index
    %0 = vector.load %arg1[%c0, %c0_0] : memref<16x32xf32, #tpu.memory_space<vmem>>, vector<16x32xf32>
    %c0_1 = arith.constant 0 : index
    %c0_2 = arith.constant 0 : index
    %1 = vector.load %arg2[%c0_1, %c0_2] : memref<32x32xf32, #tpu.memory_space<vmem>>, vector<32x32xf32>
    %c0_3 = arith.constant 0 : index
    %c0_4 = arith.constant 0 : index
    %2 = vector.load %arg3[%c0_3, %c0_4] : memref<32x32xf32, #tpu.memory_space<vmem>>, vector<32x32xf32>
    %c0_5 = arith.constant 0 : index
    %c0_6 = arith.constant 0 : index
    %c0_7 = arith.constant 0 : index
    %3 = vector.load %arg4[%c0_5, %c0_6, %c0_7] : memref<1x32x32xf32, #tpu.memory_space<vmem>>, vector<1x32x32xf32>
    %4 = vector.shape_cast %3 : vector<1x32x32xf32> to vector<32x32xf32>
    %5 = arith.mulf %2, %4 : vector<32x32xf32>
    %6 = arith.addf %1, %5 : vector<32x32xf32>
    %cst = arith.constant dense<0.000000e+00> : vector<16x32xf32>
    %7 = tpu.matmul %0, %6, %cst {dimension_numbers = #tpu.dot_dimension_numbers<[1], [0], [0], [1], [0, 0, 1, 1], [], []>} : vector<16x32xf32>, vector<32x32xf32>, vector<16x32xf32> -> vector<16x32xf32>
    %8 = math.cos %7 : vector<16x32xf32>
    %9 = vector.shape_cast %8 : vector<16x32xf32> to vector<2x8x32xf32>
    %cst_8 = arith.constant dense<0.000000e+00> : vector<2x32xf32>
    %10 = vector.multi_reduction <add>, %9, %cst_8 [1] : vector<2x8x32xf32> to vector<2x32xf32>
    %11 = math.sin %7 : vector<16x32xf32>
    %12 = vector.shape_cast %11 : vector<16x32xf32> to vector<2x8x32xf32>
    %cst_9 = arith.constant dense<0.000000e+00> : vector<2x32xf32>
    %13 = vector.multi_reduction <add>, %12, %cst_9 [1] : vector<2x8x32xf32> to vector<2x32xf32>
    %c0_10 = arith.constant 0 : index
    %c0_11 = arith.constant 0 : index
    %14 = vector.load %arg5[%c0_10, %c0_11] : memref<32x16xf32, #tpu.memory_space<vmem>>, vector<32x16xf32>
    %c0_12 = arith.constant 0 : index
    %c0_13 = arith.constant 0 : index
    %15 = vector.load %arg6[%c0_12, %c0_13] : memref<32x16xf32, #tpu.memory_space<vmem>>, vector<32x16xf32>
    %c0_14 = arith.constant 0 : index
    %c0_15 = arith.constant 0 : index
    %c0_16 = arith.constant 0 : index
    %16 = vector.load %arg7[%c0_14, %c0_15, %c0_16] : memref<2x32x16xf32, #tpu.memory_space<vmem>>, vector<1x32x16xf32>
    %17 = vector.shape_cast %16 : vector<1x32x16xf32> to vector<32x16xf32>
    %18 = arith.mulf %15, %17 : vector<32x16xf32>
    %19 = arith.addf %14, %18 : vector<32x16xf32>
    %20 = vector.extract_strided_slice %10 {offsets = [0, 0], sizes = [2, 16], strides = [1, 1]} : vector<2x32xf32> to vector<2x16xf32>
    %21 = vector.extract_strided_slice %13 {offsets = [0, 0], sizes = [2, 16], strides = [1, 1]} : vector<2x32xf32> to vector<2x16xf32>
    %22 = vector.extract_strided_slice %19 {offsets = [0, 0], sizes = [16, 16], strides = [1, 1]} : vector<32x16xf32> to vector<16x16xf32>
    %cst_17 = arith.constant dense<0.000000e+00> : vector<2x16xf32>
    %23 = tpu.matmul %20, %22, %cst_17 {dimension_numbers = #tpu.dot_dimension_numbers<[1], [0], [0], [1], [0, 0, 1, 1], [], []>} : vector<2x16xf32>, vector<16x16xf32>, vector<2x16xf32> -> vector<2x16xf32>
    %24 = vector.extract_strided_slice %19 {offsets = [16, 0], sizes = [16, 16], strides = [1, 1]} : vector<32x16xf32> to vector<16x16xf32>
    %cst_18 = arith.constant dense<0.000000e+00> : vector<2x16xf32>
    %25 = tpu.matmul %21, %24, %cst_18 {dimension_numbers = #tpu.dot_dimension_numbers<[1], [0], [0], [1], [0, 0, 1, 1], [], []>} : vector<2x16xf32>, vector<16x16xf32>, vector<2x16xf32> -> vector<2x16xf32>
    %26 = arith.addf %23, %25 : vector<2x16xf32>
    %c1 = arith.constant 1 : index
    %c0_19 = arith.constant 0 : index
    %c0_20 = arith.constant 0 : index
    %27 = vector.load %arg7[%c1, %c0_19, %c0_20] : memref<2x32x16xf32, #tpu.memory_space<vmem>>, vector<1x32x16xf32>
    %28 = vector.shape_cast %27 : vector<1x32x16xf32> to vector<32x16xf32>
    %29 = arith.mulf %15, %28 : vector<32x16xf32>
    %30 = arith.addf %14, %29 : vector<32x16xf32>
    %31 = vector.extract_strided_slice %10 {offsets = [0, 16], sizes = [2, 16], strides = [1, 1]} : vector<2x32xf32> to vector<2x16xf32>
    %32 = vector.extract_strided_slice %13 {offsets = [0, 16], sizes = [2, 16], strides = [1, 1]} : vector<2x32xf32> to vector<2x16xf32>
    %33 = vector.extract_strided_slice %30 {offsets = [0, 0], sizes = [16, 16], strides = [1, 1]} : vector<32x16xf32> to vector<16x16xf32>
    %cst_21 = arith.constant dense<0.000000e+00> : vector<2x16xf32>
    %34 = tpu.matmul %31, %33, %cst_21 {dimension_numbers = #tpu.dot_dimension_numbers<[1], [0], [0], [1], [0, 0, 1, 1], [], []>} : vector<2x16xf32>, vector<16x16xf32>, vector<2x16xf32> -> vector<2x16xf32>
    %35 = vector.extract_strided_slice %30 {offsets = [16, 0], sizes = [16, 16], strides = [1, 1]} : vector<32x16xf32> to vector<16x16xf32>
    %cst_22 = arith.constant dense<0.000000e+00> : vector<2x16xf32>
    %36 = tpu.matmul %32, %35, %cst_22 {dimension_numbers = #tpu.dot_dimension_numbers<[1], [0], [0], [1], [0, 0, 1, 1], [], []>} : vector<2x16xf32>, vector<16x16xf32>, vector<2x16xf32> -> vector<2x16xf32>
    %37 = arith.addf %34, %36 : vector<2x16xf32>
    %38 = tpu.concatenate %26, %37 in 0 : vector<2x16xf32>, vector<2x16xf32> -> vector<4x16xf32>
    %c0_23 = arith.constant 0 : index
    %c0_24 = arith.constant 0 : index
    %39 = vector.load %arg8[%c0_23, %c0_24] : memref<16x128xf32, #tpu.memory_space<vmem>>, vector<16x128xf32>
    %cst_25 = arith.constant dense<0.000000e+00> : vector<4x128xf32>
    %40 = tpu.matmul %38, %39, %cst_25 {dimension_numbers = #tpu.dot_dimension_numbers<[1], [0], [0], [1], [0, 0, 1, 1], [], []>} : vector<4x16xf32>, vector<16x128xf32>, vector<4x128xf32> -> vector<4x128xf32>
    %c0_26 = arith.constant 0 : index
    %c0_27 = arith.constant 0 : index
    %41 = vector.load %arg9[%c0_26, %c0_27] : memref<1x128xf32, #tpu.memory_space<vmem>>, vector<1x128xf32>
    %42 = vector.broadcast %41 : vector<1x128xf32> to vector<4x128xf32>
    %43 = arith.addf %40, %42 : vector<4x128xf32>
    %c0_28 = arith.constant 0 : index
    %c0_29 = arith.constant 0 : index
    %c0_30 = arith.constant 0 : index
    %44 = vector.load %arg10[%c0_28, %c0_29, %c0_30] : memref<1x4x128xf32, #tpu.memory_space<vmem>>, vector<1x4x128xf32>
    %45 = vector.shape_cast %44 : vector<1x4x128xf32> to vector<4x128xf32>
    %46 = vector.shape_cast %43 : vector<4x128xf32> to vector<1x4x128xf32>
    tpu.vector_store %arg10[%c0_28, %c0_29, %c0_30], %46 {strides = array<i32>} : memref<1x4x128xf32, #tpu.memory_space<vmem>>, vector<1x4x128xf32>,
    return
  }
  func.func @transform_0(%arg0: i32) -> (i32, i32) {
    %c0_i32 = arith.constant 0 : i32
    %c0_i32_0 = arith.constant 0 : i32
    %c0_i32_1 = arith.constant 0 : i32
    return %c0_i32, %c0_i32_0 : i32, i32
  }
  func.func @transform_1(%arg0: i32) -> (i32, i32) {
    %c0_i32 = arith.constant 0 : i32
    %c0_i32_0 = arith.constant 0 : i32
    %c0_i32_1 = arith.constant 0 : i32
    return %c0_i32, %c0_i32_0 : i32, i32
  }
  func.func @transform_2(%arg0: i32) -> (i32, i32) {
    %c0_i32 = arith.constant 0 : i32
    %c0_i32_0 = arith.constant 0 : i32
    %c0_i32_1 = arith.constant 0 : i32
    return %c0_i32, %c0_i32_0 : i32, i32
  }
  func.func @transform_3(%arg0: i32) -> (i32, i32, i32) {
    %c0_i32 = arith.constant 0 : i32
    %c0_i32_0 = arith.constant 0 : i32
    %c0_i32_1 = arith.constant 0 : i32
    return %arg0, %c0_i32, %c0_i32_0 : i32, i32, i32
  }
  func.func @transform_4(%arg0: i32) -> (i32, i32) {
    %c0_i32 = arith.constant 0 : i32
    %c0_i32_0 = arith.constant 0 : i32
    %c0_i32_1 = arith.constant 0 : i32
    return %c0_i32, %c0_i32_0 : i32, i32
  }
  func.func @transform_5(%arg0: i32) -> (i32, i32) {
    %c0_i32 = arith.constant 0 : i32
    %c0_i32_0 = arith.constant 0 : i32
    %c0_i32_1 = arith.constant 0 : i32
    return %c0_i32, %c0_i32_0 : i32, i32
  }
  func.func @transform_6(%arg0: i32) -> (i32, i32, i32) {
    %c0_i32 = arith.constant 0 : i32
    %c0_i32_0 = arith.constant 0 : i32
    %c0_i32_1 = arith.constant 0 : i32
    return %arg0, %c0_i32, %c0_i32_0 : i32, i32, i32
  }
  func.func @transform_7(%arg0: i32) -> (i32, i32) {
    %c0_i32 = arith.constant 0 : i32
    %c0_i32_0 = arith.constant 0 : i32
    %c0_i32_1 = arith.constant 0 : i32
    return %c0_i32, %c0_i32_0 : i32, i32
  }
  func.func @transform_8(%arg0: i32) -> (i32, i32) {
    %c0_i32 = arith.constant 0 : i32
    %c0_i32_0 = arith.constant 0 : i32
    %c0_i32_1 = arith.constant 0 : i32
    return %c0_i32, %c0_i32_0 : i32, i32
  }
  func.func @transform_9(%arg0: i32) -> (i32, i32, i32) {
    %c0_i32 = arith.constant 0 : i32
    %c0_i32_0 = arith.constant 0 : i32
    %c0_i32_1 = arith.constant 0 : i32
    return %arg0, %c0_i32, %c0_i32_0 : i32, i32, i32
  }
}

</mosaic_0001>

<bundles_post_ra>
// kernel: tpu_custom_call.1
= control target key start
LH: loop header
LB: loop body
LE: loop exit
PB: predicated region body
PF: predicated region fallthrough
CT: control target
= control target key end

     0   :  { %14 = vsyncpa [#allocation3], 0  ;;  %s2002_s0 = inlined_call_operand.vmem [shape: f32[16,32], index: 0, kind: input, shape index: {}]   ;;  %s2003_s1 = inlined_call_operand.vmem [shape: f32[32,32], index: 1, kind: input, shape index: {}]   ;;  %s2004_s2 = inlined_call_operand.vmem [shape: f32[32,32], index: 2, kind: input, shape index: {}]   ;;  %s2005_s3 = inlined_call_operand.vmem [shape: f32[2,32,32], index: 3, kind: input, shape index: {}]   ;;  %s2006_s4 = inlined_call_operand.vmem [shape: f32[32,16], index: 4, kind: input, shape index: {}]   ;;  %s2007_s5 = inlined_call_operand.vmem [shape: f32[32,16], index: 5, kind: input, shape index: {}]   ;;  %s2008_s6 = inlined_call_operand.vmem [shape: f32[4,32,16], index: 6, kind: input, shape index: {}]   ;;  %s2009_s7 = inlined_call_operand.vmem [shape: f32[16,128], index: 7, kind: input, shape index: {}]   ;;  %s2010_s8 = inlined_call_operand.vmem [shape: f32[1,128], index: 8, kind: input, shape index: {}]   ;;  %s2011_s9 = inlined_call_operand.hbm [shape: f32[2,4,128], index: 9, kind: output, shape index: {}]  }
   0x1   :  { %16 = vsyncpa [#allocation3 + $0x1], 0  ;;  %s1736_s30 = smov 0   ;;  %s1738_s10 = smov 0  }
   0x2   :  { %s1740_s11 = smov 0   ;;  %s1742_s12 = smov 0  }
   0x3 LB: > { %2013 = sst [smem:[#allocation5_spill]] %s1669_s11  ;;  %s1757_s13 = sadd.s32 4294967295, %s1673_s12   ;;  %s1673_s12 = sphi %s1742_s12, %s2021_s12   ;;  %s1669_s11 = sphi %s1740_s11, %s2018_s11   ;;  %s1665_s10 = sphi %s1738_s10, %s2020_s10   ;;  %s1661_s30 = sphi %s1736_s30, %s2019_s30  }
   0x4   : > { %s1408_s14 = sadd.s32 4294967294, %s1673_s12   ;;  %s1761_s15 = sadd.s32 1, %s1673_s12  }
   0x5   : > { %s228_s16 = sadd.s32 1, %s1669_s11  ;;  %s225_s17 = ssub.s32 %s1673_s12, %s1761_s15 }
   0x6   : > { %p238_p0 = scmp.ne.s32.totalorder %s1669_s11, %s1665_s10  ;;  %p226_p1 = scmp.eq.s32.totalorder %s225_s17, 0 }
   0x7   : > { %p239_p2 = scmp.eq.s32.totalorder %s1757_s13, 1  ;;  %p244_p3 = scmp.ne.s32.totalorder %s1665_s10, %s1661_s30 }
   0x8   : > { %p245_p4 = scmp.eq.s32.totalorder %s1408_s14, 1  ;;  %p1411_p7 = scmp.ge.s32.totalorder %s1673_s12, 1 }
   0x9   : > { %s1772_s18 = scalar_select %p226_p1, %s1669_s11, %s228_s16  }
   0xa   : > { %p1774_p5 = por %p239_p2, %p238_p0  ;;  %p1778_p6 = por %p245_p4, %p244_p3 }
   0xb   : > { %2014 = sst [smem:[#allocation6_spill]] %s1772_s18  ;;  %p302_p8 = scmp.lt.s32.totalorder %s1673_s12, 3 }
   0xd   : > { %p303_p9 = pnand %p1411_p7, %p302_p8 }
   0xe   : > { %p344_p10 = scmp.lt.s32.totalorder (!%p303_p9), %s1757_s13, 1  ;;  %vm378_vm0 = vcmask (!%p303_p9), 261120   ;;  %v356_v0 = vld [vmem:[%s2002_s0] sm:$0xff] (!%p303_p9)  ;;  %v363_v3 = vld [vmem:[%s2004_s2 + $0x8] sm:$0xff] (!%p303_p9)  ;;  %v364_v4 = vld [vmem:[%s2004_s2 + $0x10] sm:$0xff] (!%p303_p9)  ;;  %v1675_v24 = vmov (!%p303_p9), 0.0|0.0  }
   0xf   : > { %306 = sbr.rel (%p303_p9) target bundleno = 922 (0x39a), region = 56  ;;  %1481 = vmatprep.mubr.msk.f32.mxu0 (!%p303_p9), %vm378_vm0, %v356_v0  ;;  %v358_v1 = vld [vmem:[%s2003_s1] sm:$0xff] (!%p303_p9)  ;;  %v359_v5 = vld [vmem:[%s2003_s1 + $0x8] sm:$0xff] (!%p303_p9)  ;;  %v360_v6 = vld [vmem:[%s2003_s1 + $0x10] sm:$0xff] (!%p303_p9)  ;;  %1527 = vmatprep.subr.bf16.mxu1 (!%p303_p9), %v1675_v24  ;;  %vm1676_vm1 = vmmov (!%p303_p9), 0   ;;  %v1677_v25 = vmov (!%p303_p9), 0.0  }
  0x10   : > { %v362_v2 = vld [vmem:[%s2004_s2] sm:$0xff] (!%p303_p9)  ;;  %v365_v7 = vld [vmem:[%s2004_s2 + $0x18] sm:$0xff] (!%p303_p9)  ;;  %v357_v23 = vld [vmem:[%s2002_s0 + $0x8] sm:$0xff] (!%p303_p9)  ;;  %1488 = vmatprep.mubr.msk.f32.mxu1 (!%p303_p9), %vm1676_vm1, %v1677_v25  ;;  %s1684_s26 = smov (!%p303_p9), 112   ;;  %s341_s11 = sand.u32 (!%p303_p9), 1, %s1665_s10  }
  0x11   : > { %v361_v13 = vld [vmem:[%s2003_s1 + $0x18] sm:$0xff] (!%p303_p9)  ;;  %v908_v26 = vld [vmem:[%s2007_s5 + $0x10] sm:$0xff] (!%p303_p9)  ;;  %s1412_s18 = sshll.u32 (!%p303_p9), %s341_s11, 2  ;;  %s1447_s17 = sshll.u32 (!%p303_p9), %s1757_s13, 6 }
  0x12   : > { %v909_v27 = vld [vmem:[%s2007_s5 + $0x18] sm:$0xff] (!%p303_p9)  ;;  %v904_v28 = vld [vmem:[%s2006_s4 + $0x10] sm:$0xff] (!%p303_p9)  ;;  %s343_s22 = scalar_lea.vmem (!%p303_p9), [#allocation2], %s1412_s18  ;;  %s1324_s28 = scalar_lea.sflag (!%p303_p9), [#allocation3], %s341_s11 }
  0x13   : > { %v905_v29 = vld [vmem:[%s2006_s4 + $0x18] sm:$0xff] (!%p303_p9)  ;;  %s1337_s23 = sshll.u32 (!%p303_p9), %s343_s22, 4  ;;  %s1962_s23 = int_to_ptr.vmem [resolvable:$true] %s1337_s23 }
  0x14   : > { %s1611_s29 = scalar_lea.vmem (!%p303_p9), %s1962_s23, 64 }
  0x15   : > { %p1612_p12 = scmp.ne.s32.totalorder (!%p303_p9), %s1962_s23, %s1611_s29 }
  0x16   : > { %s345_s21 = scalar_select %p344_p10, %s1757_s13, 1 }
  0x17   : > { %p1613_p13 = pnand %p1612_p12, %p1774_p5 }
  0x18   : > { %s1450_s24 = sshll.u32 %s345_s21, 5 }
  0x19   : > { %s348_s21 = scalar_lea.vmem %s2005_s3, %s1450_s24  ;;  %s1415_s24 = sshll.u32 %s1757_s13, 1 }
  0x1a   : > { %v366_v8 = vld [vmem:[%s348_s21] sm:$0xff]  ;;  %v367_v9 = vld [vmem:[%s348_s21 + $0x8] sm:$0xff]  ;;  %v368_v10 = vld [vmem:[%s348_s21 + $0x10] sm:$0xff]  ;;  %p350_p11 = scmp.lt.s32.totalorder %s1415_s24, 3  ;;  %p1614_p0 = pneg %p1613_p13 }
  0x1b   : > { %v370_v11 = vmul.f32 %v366_v8, %v362_v2  ;;  %v371_v12 = vmul.f32 %v367_v9, %v363_v3  ;;  %v369_v14 = vld [vmem:[%s348_s21 + $0x18] sm:$0xff]  ;;  %v372_v15 = vmul.f32 %v368_v10, %v364_v4  ;;  %v1678_v2 = vmov 683565275   ;;  %s1685_s13 = smov [#allocation2]  }
  0x1c   : > { %v373_v16 = vmul.f32 %v369_v14, %v365_v7  ;;  %s2023_s24 = smov (!%p350_p11, %s1415_s24), 3  ;;  %v1680_v8 = vmov 2131351028   ;;  %v1681_v10 = vmov 2102212464  }
  0x1d   : > { %v374_v17 = vadd.f32 %v370_v11, %v358_v1  ;;  %v375_v18 = vadd.f32 %v371_v12, %v359_v5  ;;  %v376_v19 = vadd.f32 %v372_v15, %v360_v6  ;;  %s1451_s16 = sshll.u32 %s2023_s24, 5  ;;  %v1679_v6 = vmov 2475754826  }
  0x1e   : > { %v377_v20 = vadd.f32 %v373_v16, %v361_v13  ;;  %s1837_s27 = scalar_lea.vmem %s2008_s6, %s1451_s16  ;;  %v1682_v12 = vmov 920167782  }
  0x1f   : > { %v1519_v21 = vpack.c.bf16 %v375_v18, %v374_v17  ;;  %v912_v30 = vld [vmem:[%s1837_s27 + $0x10] sm:$0xff]  ;;  %v913_v31 = vld [vmem:[%s1837_s27 + $0x18] sm:$0xff] }
  0x20   : > { %v1523_v22 = vpack.c.bf16 %v377_v20, %v376_v19  ;;  %v916_v32 = vmul.f32 %v912_v30, %v908_v26  ;;  %v917_v33 = vmul.f32 %v913_v31, %v909_v27  ;;  %v1440_v36 = vld [vmem:[%s1837_s27 + $0x30] sm:$0xff]  ;;  %v1441_v37 = vld [vmem:[%s1837_s27 + $0x38] sm:$0xff]  ;;  %v1683_v19 = vmov 1326507024  }
  0x21   : > { %1520 = vmatprep.subr.bf16.mxu0 %v1519_v21  ;;  %v1081_v39 = vmul.f32 %v1440_v36, %v908_v26  ;;  %v1082_v40 = vmul.f32 %v1441_v37, %v909_v27 }
  0x22   : > { %1522 = vmatpush3.bf16.msra.mxu0 %v1519_v21  ;;  %v920_v34 = vadd.f32 %v916_v32, %v904_v28  ;;  %v921_v35 = vadd.f32 %v917_v33, %v905_v29 }
  0x23   : > { %1524 = vmatprep.subr.bf16.mxu0 %v1523_v22  ;;  %v1085_v41 = vadd.f32 %v1081_v39, %v904_v28  ;;  %v1086_v42 = vadd.f32 %v1082_v40, %v905_v29 }
  0x24   : > { %v1528_v38 = vpack.c.bf16 %v921_v35, %v920_v34 }
  0x25   : > { %v1534_v43 = vpack.c.bf16 %v1086_v42, %v1085_v41 }
  0x26   : > { %1526 = vmatpush3.bf16.msra.mxu0 %v1523_v22  ;;  %1529 = vmatpush3.bf16.msra.mxu1 %v1528_v38 }
  0x27   : > { %1533 = vmatprep.subr.bf16.mxu0 %v1675_v24  ;;  %1530 = vmatprep.subr.bf16.mxu1 %v1675_v24 }
  0x29   : > { %1482 = vmatmul.mubr.msk.f32.vlgmr.msra.gmra.mrb[0].mxu0 %vm378_vm0, %v357_v23 }
  0x2a   : > { %1502 = vmatprep.mubr.msk.f32.mxu0 %vm1676_vm1, %v1677_v25  ;;  %1535 = vmatpush3.bf16.msra.mxu0 %v1534_v43 }
  0x2b   : > { %1536 = vmatprep.subr.bf16.mxu0 %v1675_v24 }
  0xfc   : > { %v1851_v44 = vpop.f32.mrb[0].mxu0 }
  0xfd   : > { %v563_v45 = vand.u32 2147483647, %v1851_v44  ;;  %v566_v46 = vand.u32 2139095040, %v1851_v44  ;;  %v1855_v47 = vpop.f32.mrb[1].mxu0 }
  0xfe   : > { %v463_v48 = vand.u32 2139095040, %v1855_v47  ;;  %v460_v51 = vand.u32 2147483647, %v1855_v47 }
  0xff   : > { %v567_v49 = vshrl.u32 %v566_v46, 23  ;;  %v570_v50 = vand.u32 8388607, %v563_v45 }
 0x100   : > { %v464_v52 = vshrl.u32 %v463_v48, 23  ;;  %v1863_v57 = vand.u32 8388607, %v460_v51 }
 0x101   : > { %v1424_v53 = vadd.s32 4294967169, %v567_v49  ;;  %v571_v56 = vor.u32 8388608, %v570_v50 }
 0x102   : > { %v1420_v54 = vadd.s32 4294967169, %v464_v52  ;;  %v468_v0 = vor.u32 8388608, %v1863_v57 }
 0x103   : > { %v573_v55 = vadd.s32 1, %v1424_v53  ;;  %v1865_v63 = vshll.u32 %v571_v56, 8 }
 0x104   : > { %v470_v58 = vadd.s32 1, %v1420_v54 }
 0x105   : > { %vm574_vm2 = vcmp.gt.s32.totalorder %v573_v55, 0 }
 0x106   : > { %v575_v59 = vsel %vm574_vm2, %v573_v55, 0  ;;  %vm471_vm3 = vcmp.gt.s32.totalorder %v470_v58, 0  ;;  %vm565_vm2 = vcmp.lt.s32.totalorder %v1851_v44, 0 }
 0x107   : > { %v576_v60 = vshrl.u32 %v575_v59, 5  ;;  %v577_v61 = vand.u32 31, %v575_v59  ;;  %v472_v62 = vsel %vm471_vm3, %v470_v58, 0  ;;  %vm564_vm3 = vcmp.le.f32.partialorder %v563_v45, 0.7853982 }
 0x108   : > { %v1868_v4 = vshrl.u32 %v472_v62, 5  ;;  %v474_v5 = vand.u32 31, %v472_v62 }
 0x109   : > { %v578_v1 = vsub.s32 32, %v577_v61  ;;  %v580_v3 = vshll.u32 %v1678_v2, %v577_v61  ;;  %v583_v7 = vshll.u32 %v1679_v6, %v577_v61  ;;  %v586_v9 = vshll.u32 %v1680_v8, %v577_v61 }
 0x10a   : > { %v589_v11 = vshll.u32 %v1681_v10, %v577_v61  ;;  %v592_v13 = vshll.u32 %v1682_v12, %v577_v61  ;;  %vm595_vm4 = vcmp.lt.s32.totalorder %v576_v60, 1  ;;  %vm596_vm5 = vcmp.lt.s32.totalorder %v576_v60, 2 }
 0x10b   : > { %v581_v14 = vshrl.u32 %v1679_v6, %v578_v1  ;;  %v584_v15 = vshrl.u32 %v1680_v8, %v578_v1  ;;  %v587_v16 = vshrl.u32 %v1681_v10, %v578_v1  ;;  %v579_v17 = vshrl.u32 %v1678_v2, %v578_v1 }
 0x10c   : > { %v590_v18 = vshrl.u32 %v1682_v12, %v578_v1  ;;  %v593_v20 = vshrl.u32 %v1683_v19, %v578_v1  ;;  %v475_v26 = vsub.s32 32, %v474_v5  ;;  %vm597_vm6 = vcmp.lt.s32.totalorder %v576_v60, 3 }
 0x10d   : > { %v582_v21 = vor.u32 %v581_v14, %v580_v3  ;;  %v585_v22 = vor.u32 %v584_v15, %v583_v7  ;;  %v588_v23 = vor.u32 %v587_v16, %v586_v9  ;;  %vm598_vm7 = vcmp.lt.s32.totalorder %v576_v60, 4 }
 0x10e   : > { %v591_v27 = vor.u32 %v590_v18, %v589_v11  ;;  %v594_v28 = vor.u32 %v593_v20, %v592_v13  ;;  %v477_v36 = vshll.u32 %v1678_v2, %v474_v5  ;;  %v478_v39 = vshrl.u32 %v1679_v6, %v475_v26 }
 0x10f   : > { %v599_v29 = vsel %vm595_vm4, %v579_v17, %v582_v21  ;;  %v600_v30 = vsel %vm598_vm7, %v588_v23, 2102212464  ;;  %v603_v31 = vsel %vm595_vm4, %v582_v21, %v585_v22  ;;  %v607_v32 = vsel %vm595_vm4, %v585_v22, %v588_v23 }
 0x110   : > { %v601_v33 = vsel %vm597_vm6, %v585_v22, %v600_v30  ;;  %v604_v34 = vsel %vm598_vm7, %v591_v27, 920167782  ;;  %v608_v35 = vsel %vm598_vm7, %v594_v28, 1326507024  ;;  %v480_v40 = vshll.u32 %v1679_v6, %v474_v5 }
 0x111   : > { %v605_v37 = vsel %vm597_vm6, %v588_v23, %v604_v34  ;;  %v609_v38 = vsel %vm597_vm6, %v591_v27, %v608_v35  ;;  %v602_v41 = vsel %vm596_vm5, %v599_v29, %v601_v33  ;;  %v481_v46 = vshrl.u32 %v1680_v8, %v475_v26 }
 0x112   : > { %v606_v42 = vsel %vm596_vm5, %v603_v31, %v605_v37  ;;  %v610_v43 = vsel %vm596_vm5, %v607_v32, %v609_v38  ;;  %v479_v53 = vor.u32 %v478_v39, %v477_v36  ;;  %v483_v55 = vshll.u32 %v1680_v8, %v474_v5 }
 0x113   : > { %v1877_v48 = vmul.u32.u64.low %v1865_v63, %v610_v43  ;;  %v1878_v49 = vmul.u32.u64.high %v1865_v63, %v610_v43, %v1877_v48  ;;  %v1881_v50 = vmul.u32.u64.low %v1865_v63, %v606_v42  ;;  %v1882_v52 = vmul.u32.u64.high %v1865_v63, %v606_v42, %v1881_v50 }
 0x114   : > { %v482_v54 = vor.u32 %v481_v46, %v480_v40  ;;  %v484_v56 = vshrl.u32 %v1681_v10, %v475_v26  ;;  %v486_v57 = vshll.u32 %v1681_v10, %v474_v5  ;;  %v487_v58 = vshrl.u32 %v1682_v12, %v475_v26 }
 0x115   : > { %v490_v59 = vshrl.u32 %v1683_v19, %v475_v26  ;;  %v508_v61 = vshll.u32 %v468_v0, 8  ;;  %v618_v60 = vmul.u32 %v1865_v63, %v602_v41  ;;  %v476_v62 = vshrl.u32 %v1678_v2, %v475_v26 }
 0x116   : > { %v485_v1 = vor.u32 %v484_v56, %v483_v55  ;;  %v489_v3 = vshll.u32 %v1682_v12, %v474_v5  ;;  %vm620_vm8 = vc.u32 %v1878_v49, %v1881_v50  ;;  %v621_v6 = vadd.s32 1, %v1882_v52 }
 0x117   : > { %v488_v7 = vor.u32 %v487_v58, %v486_v57  ;;  %vm492_vm9 = vcmp.lt.s32.totalorder %v1868_v4, 1  ;;  %vm494_vm10 = vcmp.lt.s32.totalorder %v1868_v4, 3  ;;  %vm495_vm11 = vcmp.lt.s32.totalorder %v1868_v4, 4 }
 0x118   : > { %v491_v9 = vor.u32 %v490_v59, %v489_v3  ;;  %v500_v8 = vsel %vm492_vm9, %v479_v53, %v482_v54  ;;  %v622_v0 = vsel %vm620_vm8, %v621_v6, %v1882_v52  ;;  %v497_v10 = vsel %vm495_vm11, %v485_v1, 2102212464 }
 0x119   : > { %v501_v63 = vsel %vm495_vm11, %v488_v7, 920167782  ;;  %v504_v2 = vsel %vm492_vm9, %v482_v54, %v485_v1  ;;  %v623_v11 = vadd.s32 %v622_v0, %v618_v60  ;;  %vm493_vm12 = vcmp.lt.s32.totalorder %v1868_v4, 2 }
 0x11a   : > { %v502_v5 = vsel %vm494_vm10, %v485_v1, %v501_v63  ;;  %v505_v12 = vsel %vm495_vm11, %v491_v9, 1326507024  ;;  %v496_v13 = vsel %vm492_vm9, %v476_v62, %v479_v53  ;;  %v498_v14 = vsel %vm494_vm10, %v482_v54, %v497_v10 }
 0x11b   : > { %v503_v15 = vsel %vm493_vm12, %v500_v8, %v502_v5  ;;  %v506_v16 = vsel %vm494_vm10, %v488_v7, %v505_v12  ;;  %v624_v17 = vadd.s32 536870912, %v623_v11  ;;  %v499_v26 = vsel %vm493_vm12, %v496_v13, %v498_v14 }
 0x11c   : > { %v507_v18 = vsel %vm493_vm12, %v504_v2, %v506_v16  ;;  %v1892_v19 = vmul.u32.u64.low %v508_v61, %v503_v15  ;;  %v1893_v20 = vmul.u32.u64.high %v508_v61, %v503_v15, %v1892_v19  ;;  %v515_v4 = vmul.u32 %v508_v61, %v499_v26 }
 0x11d   : > { %v1895_v21 = vmul.u32.u64.low %v508_v61, %v507_v18  ;;  %v1896_v22 = vmul.u32.u64.high %v508_v61, %v507_v18, %v1895_v21  ;;  %v625_v23 = vshrl.u32 %v624_v17, 30  ;;  %v619_v42 = vadd.s32 %v1881_v50, %v1878_v49 }
 0x11e   : > { %v518_v28 = vadd.s32 1, %v1893_v20  ;;  %vm462_vm4 = vcmp.lt.s32.totalorder %v1855_v47, 0  ;;  %vm461_vm5 = vcmp.le.f32.partialorder %v460_v51, 0.7853982  ;;  %vm655_vm12 = vweird.f32 %v1851_v44 }
 0x11f   : > { %v626_v27 = vshll.u32 %v625_v23, 30  ;;  %vm517_vm13 = vc.u32 %v1896_v22, %v1892_v19  ;;  %v516_v1 = vadd.s32 %v1892_v19, %v1896_v22  ;;  %v649_v50 = vsub.s32 4, %v625_v23 }
 0x120   : > { %v519_v30 = vsel %vm517_vm13, %v518_v28, %v1893_v20 }
 0x121   : > { %v627_v29 = vsub.s32 %v623_v11, %v626_v27  ;;  %v520_v31 = vadd.s32 %v519_v30, %v515_v4  ;;  %v650_v11 = vsel %vm565_vm2, %v649_v50, %v625_v23 }
 0x122   : > { %v652_v13 = vsel %vm564_vm3, 0, %v650_v11 }
 0x123   : > { %v629_v32 = vsub.s32 0, %v627_v29  ;;  %v521_v33 = vadd.s32 536870912, %v520_v31  ;;  %v877_v18 = vadd.s32 3, %v652_v13  ;;  %v656_v21 = vand.u32 3, %v652_v13  ;;  %v902_v13 = vld [vmem:[%s2006_s4] sm:$0xff] }
 0x125   : > { %v1425_v34 = vmin.u32 %v629_v32, %v627_v29  ;;  %v522_v35 = vshrl.u32 %v521_v33, 30  ;;  %v878_v22 = vand.u32 3, %v877_v18  ;;  %vm658_vm6 = vcmp.eq.s32.totalorder %v656_v21, 0 }
 0x126   : > { %vm661_vm7 = vcmp.eq.s32.totalorder %v656_v21, 2  ;;  %vm657_vm10 = vcmp.lt.s32.totalorder %v656_v21, 2 }
 0x127   : > { %v631_v36 = vclz %v1425_v34  ;;  %v523_v37 = vshll.u32 %v522_v35, 30  ;;  %v546_v17 = vsub.s32 4, %v522_v35  ;;  %vm883_vm8 = vcmp.eq.s32.totalorder %v878_v22, 2 }
 0x128   : > { %vm880_vm9 = vcmp.eq.s32.totalorder %v878_v22, 0  ;;  %vm879_vm11 = vcmp.lt.s32.totalorder %v878_v22, 2 }
 0x129   : > { %v1426_v38 = vadd.s32 4294967294, %v631_v36  ;;  %v524_v39 = vsub.s32 %v520_v31, %v523_v37  ;;  %v547_v20 = vsel %vm462_vm4, %v546_v17, %v522_v35 }
 0x12a   : > { %v549_v27 = vsel %vm461_vm5, 0, %v547_v20 }
 0x12b   : > { %vm1427_vm14 = vcmp.lt.s32.totalorder %v1426_v38, 0  ;;  %v526_v41 = vsub.s32 0, %v524_v39  ;;  %v773_v51 = vadd.s32 3, %v549_v27 }
 0x12c   : > { %v634_v40 = vsel %vm1427_vm14, 0, %v1426_v38  ;;  %v553_v38 = vand.u32 3, %v549_v27 }
 0x12d   : > { %v635_v43 = vsub.s32 32, %v634_v40  ;;  %v639_v46 = vsub.s32 4294967266, %v634_v40  ;;  %v1421_v48 = vmin.u32 %v526_v41, %v524_v39  ;;  %v636_v52 = vshll.u32 %v627_v29, %v634_v40 }
 0x12e   : > { %v774_v40 = vand.u32 3, %v773_v51  ;;  %vm554_vm13 = vcmp.lt.s32.totalorder %v553_v38, 2  ;;  %vm555_vm14 = vcmp.eq.s32.totalorder %v553_v38, 0  ;;  %v1438_v51 = vld [vmem:[%s1837_s27 + $0x20] sm:$0xff] }
 0x12f   : > { %v637_v53 = vshrl.u32 %v619_v42, %v635_v43  ;;  %v640_v54 = vadd.s32 127, %v639_v46  ;;  %v528_v55 = vclz %v1421_v48 }
 0x131   : > { %v638_v56 = vor.u32 %v637_v53, %v636_v52  ;;  %v641_v57 = vshll.u32 %v640_v54, 23  ;;  %v1422_v58 = vadd.s32 4294967294, %v528_v55 }
 0x133   : > { %v642_v59 = vor.u32 4788187, %v641_v57  ;;  %vm1423_vm15 = vcmp.lt.s32.totalorder %v1422_v58, 0  ;;  %v645_v60 = vcvt.s32.f32 %v638_v56 }
 0x134   : > { %v531_v62 = vsel %vm1423_vm15, 0, %v1422_v58  ;;  %vm558_vm15 = vcmp.eq.s32.totalorder %v553_v38, 2 }
 0x135   : > { %v643_v61 = vand.u32 2147483647, %v642_v59  ;;  %v532_v3 = vsub.s32 32, %v531_v62  ;;  %v536_v6 = vsub.s32 4294967266, %v531_v62  ;;  %v533_v7 = vshll.u32 %v524_v39, %v531_v62 }
 0x137   : > { %v646_v49 = vmul.f32 %v645_v60, %v643_v61  ;;  %v534_v9 = vshrl.u32 %v516_v1, %v532_v3  ;;  %v537_v8 = vadd.s32 127, %v536_v6  ;;  %v906_v6 = vld [vmem:[%s2007_s5] sm:$0xff] }
 0x139   : > { %v647_v0 = vxor.u32 2147483648, %v646_v49  ;;  %v535_v10 = vor.u32 %v534_v9, %v533_v7  ;;  %v538_v63 = vshll.u32 %v537_v8, 23  ;;  %v907_v7 = vld [vmem:[%s2007_s5 + $0x8] sm:$0xff]  ;;  %v910_v9 = vld [vmem:[%s1837_s27] sm:$0xff] }
 0x13a   : > { %v911_v8 = vld [vmem:[%s1837_s27 + $0x8] sm:$0xff] }
 0x13b   : > { %v648_v2 = vsel %vm565_vm2, %v647_v0, %v646_v49  ;;  %v539_v12 = vor.u32 4788187, %v538_v63  ;;  %v542_v15 = vcvt.s32.f32 %v535_v10  ;;  %vm779_vm2 = vcmp.eq.s32.totalorder %v774_v40, 2 }
 0x13c   : > { %v651_v5 = vsel %vm564_vm3, %v1851_v44, %v648_v2  ;;  %vm775_vm3 = vcmp.lt.s32.totalorder %v774_v40, 2 }
 0x13d   : > { %1603 = vcosq.f32 %v651_v5  ;;  %v540_v14 = vand.u32 2147483647, %v539_v12  ;;  %v915_v12 = vmul.f32 %v911_v8, %v907_v7 }
 0x13e   : > { %1605 = vsinq.f32 %v651_v5  ;;  %v914_v5 = vmul.f32 %v910_v9, %v906_v6 }
 0x13f   : > { %v543_v16 = vmul.f32 %v542_v15, %v540_v14  ;;  %v903_v14 = vld [vmem:[%s2006_s4 + $0x8] sm:$0xff] }
 0x140   : > { %v918_v20 = vadd.f32 %v914_v5, %v902_v13  ;;  %v919_v21 = vadd.f32 %v915_v12, %v903_v14 }
 0x141   : > { %v544_v19 = vxor.u32 2147483648, %v543_v16 }
 0x143   : > { %v545_v45 = vsel %vm462_vm4, %v544_v19, %v543_v16  ;;  %vm776_vm4 = vcmp.eq.s32.totalorder %v774_v40, 0  ;;  %v1241_v40 = vld [vmem:[%s2009_s7 + $0x8] sm:$0xff] }
 0x144   : > { %v548_v23 = vsel %vm461_vm5, %v1855_v47, %v545_v45  ;;  %vm552_vm5 = vweird.f32 %v1855_v47 }
 0x145   : > { %1607 = vcosq.f32 %v548_v23 }
 0x146   : > { %1609 = vsinq.f32 %v548_v23 }
 0x147   : > { %v1604_v26 = vpop.eup %1603 }
 0x148   : > { %v1606_v28 = vpop.eup %1605  ;;  %v662_v4 = vxor.u32 2147483648, %v1604_v26 }
 0x149   : > { %v659_v29 = vxor.u32 2147483648, %v1606_v28 }
 0x14a   : > { %v663_v30 = vsel %vm661_vm7, %v662_v4, %v1606_v28  ;;  %v885_v31 = vsel %vm883_vm8, %v662_v4, %v1606_v28  ;;  %vm1238_vm7 = vcmask 1041408  }
 0x14b   : > { %v660_v32 = vsel %vm658_vm6, %v1604_v26, %v659_v29  ;;  %v882_v33 = vsel %vm880_vm9, %v1604_v26, %v659_v29  ;;  %vm926_vm6 = vcmask 130048   ;;  %v1531_v29 = vpack.c.bf16 %v919_v21, %v918_v20 }
 0x14c   : > { %v664_v34 = vsel %vm657_vm10, %v660_v32, %v663_v30  ;;  %v886_v35 = vsel %vm879_vm11, %v882_v33, %v885_v31  ;;  %v1439_v32 = vld [vmem:[%s1837_s27 + $0x28] sm:$0xff]  ;;  %v1079_v33 = vmul.f32 %v1438_v51, %v906_v6  ;;  %s1615_s27 = sshll.u32 %s1685_s13, 4  ;;  %s1616_s27 = int_to_ptr.vmem [resolvable:$false] %s1615_s27 }
 0x14d   : > { %v665_v36 = vsel %vm655_vm12, nan, %v664_v34  ;;  %v887_v37 = vsel %vm655_vm12, nan, %v886_v35  ;;  %v1080_v34 = vmul.f32 %v1439_v32, %v907_v7  ;;  %s1617_s14 = scalar_lea.vmem %s1616_s27, 128  ;;  %p1618_p1 = scmp.lt.s32.totalorder %s1962_s23, %s1616_s27 }
 0x14e   : > { %v673_v39 = vsel %vm378_vm0, %v665_v36, 0.0  ;;  %v895_v41 = vsel %vm378_vm0, %v887_v37, 0.0  ;;  %v1083_v35 = vadd.f32 %v1079_v33, %v902_v13  ;;  %p1619_p2 = scmp.lt.s32.totalorder %s1617_s14, %s1611_s29 }
 0x14f   : > { %v674_v42 = vrot.slane %v673_v39, 4  ;;  %v896_v43 = vrot.slane %v895_v41, 4  ;;  %v1608_v46 = vpop.eup %1607  ;;  %v1084_v36 = vadd.f32 %v1080_v34, %v903_v14 }
 0x150   : > { %v1610_v48 = vpop.eup %1609  ;;  %v559_v52 = vxor.u32 2147483648, %v1608_v46  ;;  %p1620_p3 = por %p1619_p2, %p1618_p1 }
 0x151   : > { %v897_v53 = vadd.f32 %v896_v43, %v895_v41  ;;  %v675_v54 = vadd.f32 %v674_v42, %v673_v39  ;;  %v556_v44 = vxor.u32 2147483648, %v1610_v48  ;;  %v1537_v37 = vpack.c.bf16 %v1084_v36, %v1083_v35  ;;  %v1240_v39 = vld [vmem:[%s2009_s7] sm:$0xff] }
 0x152   : > { %v560_v55 = vsel %vm558_vm15, %v559_v52, %v1610_v48  ;;  %v781_v56 = vsel %vm779_vm2, %v559_v52, %v1610_v48  ;;  %v1540_v41 = vpack.c.bf16 %v1241_v40, %v1240_v39  ;;  %p1621_p4 = pnand %p1620_p3, %p1614_p0 }
 0x153   : > { %v557_v57 = vsel %vm555_vm14, %v1608_v46, %v556_v44  ;;  %v778_v58 = vsel %vm776_vm4, %v1608_v46, %v556_v44  ;;  %v898_v59 = vrot.slane %v897_v53, 2  ;;  %v676_v61 = vrot.slane %v675_v54, 2 }
 0x154   : > { %v561_v60 = vsel %vm554_vm13, %v557_v57, %v560_v55  ;;  %v782_v62 = vsel %vm775_vm3, %v778_v58, %v781_v56 }
 0x155   : > { %v562_v1 = vsel %vm552_vm5, nan, %v561_v60  ;;  %v783_v3 = vsel %vm552_vm5, nan, %v782_v62  ;;  %v899_v10 = vadd.f32 %v898_v59, %v897_v53  ;;  %v677_v63 = vadd.f32 %v676_v61, %v675_v54  ;;  %v1444_v53 = vld [vmem:[%s2010_s8] ss:$0 sm:$0xff] }
 0x156   : > { %v666_v49 = vsel %vm378_vm0, %v562_v1, 0.0  ;;  %v888_v50 = vsel %vm378_vm0, %v783_v3, 0.0  ;;  %vm924_vm0 = vcmask 1041409  }
 0x157   : > { %v667_v47 = vrot.slane %v666_v49, 4  ;;  %v889_v0 = vrot.slane %v888_v50, 4  ;;  %v900_v16 = vrot.slane %v899_v10, 1  ;;  %v678_v18 = vrot.slane %v677_v63, 1 }
 0x159   : > { %v890_v2 = vadd.f32 %v889_v0, %v888_v50  ;;  %v668_v11 = vadd.f32 %v667_v47, %v666_v49  ;;  %v901_v23 = vadd.f32 %v900_v16, %v899_v10  ;;  %v679_v27 = vadd.f32 %v678_v18, %v677_v63 }
 0x15b   : > { %v891_v15 = vrot.slane %v890_v2, 2  ;;  %v669_v17 = vrot.slane %v668_v11, 2 }
 0x15d   : > { %v892_v19 = vadd.f32 %v891_v15, %v890_v2  ;;  %v670_v45 = vadd.f32 %v669_v17, %v668_v11 }
 0x15f   : > { %v893_v22 = vrot.slane %v892_v19, 1  ;;  %v671_v26 = vrot.slane %v670_v45, 1 }
 0x161   : > { %v894_v28 = vadd.f32 %v893_v22, %v892_v19  ;;  %v672_v4 = vadd.f32 %v671_v26, %v670_v45 }
 0x163   : > { %v925_v30 = vsel %vm924_vm0, %v901_v23, %v894_v28  ;;  %v1001_v31 = vsel %vm924_vm0, %v679_v27, %v672_v4 }
 0x164   : > { %1087 = vrot.lane.b32.xlu0 %v925_v30, %s1684_s26  ;;  %1489 = vmatmul.mubr.msk.f32.vlgmr.msra.gmra.mrb[0].mxu1 %vm926_vm6, %v925_v30 }
 0x165   : > { %1532 = vmatpush3.bf16.msra.mxu1 %v1531_v29  ;;  %1495 = vmatprep.mubr.msk.f32.mxu1 %vm1676_vm1, %v1677_v25 }
 0x166   : > { %1539 = vmatprep.subr.bf16.mxu1 %v1675_v24 }
 0x168   : > { %1161 = vrot.lane.b32.xlu0 %v1001_v31, %s1684_s26  ;;  %s1960_s26 = scalar_lea.hbm %s2011_s9, %s1447_s17 }
 0x16c   : > { %1496 = vmatmul.mubr.msk.f32.vlgmr.msra.gmra.mrb[0].mxu1 %vm926_vm6, %v1001_v31 }
 0x16d   : > { %1516 = vmatprep.mubr.msk.f32.mxu1 %vm1676_vm1, %v1677_v25  ;;  %1541 = vmatpush3.bf16.msra.mxu1 %v1540_v41 }
 0x1d6   : > { %v1088_v38 = vpop.permute.xlu0 %1087 }
 0x1d7   : > { %1503 = vmatmul.mubr.msk.f32.vlgmr.msra.gmra.mrb[2].mxu0 %vm926_vm6, %v1088_v38 }
 0x1d8   : > { %1538 = vmatpush3.bf16.msra.mxu0 %v1537_v37  ;;  %1509 = vmatprep.mubr.msk.f32.mxu0 %vm1676_vm1, %v1677_v25 }
 0x1da   : > { %v1162_v24 = vpop.permute.xlu0 %1161 }
 0x1df   : > { %1510 = vmatmul.mubr.msk.f32.vlgmr.msra.gmra.mrb[2].mxu0 %vm926_vm6, %v1162_v24 }
 0x23f   : > { %v1070_v42 = vpop.f32.mrb[0].mxu1 }
 0x240   : > { %v1497_v43 = vpop.f32.mrb[1].mxu1 }
 0x2b2   : > { %v1231_v46 = vpop.f32.mrb[2].mxu0 }
 0x2b3   : > { %v1236_v48 = vrot.slane %v1231_v46, 6  ;;  %v1511_v25 = vpop.f32.mrb[3].mxu0 }
 0x2b5   : > { %v1239_v52 = vsel %vm1238_vm7, %v1070_v42, %v1236_v48 }
 0x2b6   : > { %1517 = vmatmul.mubr.msk.f32.vlgmr.msra.gmra.mrb[2].mxu1 %vm926_vm6, %v1239_v52 }
 0x389   : > { %v1318_v54 = vpop.f32.mrb[2].mxu1 }
 0x38a   : > { %v1319_v44 = vadd.f32 %v1444_v53, %v1318_v54  ;;  %v1518_v55 = vpop.f32.mrb[3].mxu1 }
 0x38c   : > { %1322 = vst [vmem:[%s343_s22] sm:$0xf] %v1319_v44 }
 0x38d   : > { %1624 = shalt.err (!%p1621_p4)
}
 0x38e   : > { %s1625_s11 = scalar_lea.hbm %s1960_s26, 64  ;;  %s1629_s16 = scalar_lea.hbm %s2011_s9, 128 }
 0x38f   : > { %p1626_p7 = scmp.ne.s32.totalorder %s1960_s26, %s1625_s11  ;;  %p1630_p10 = scmp.lt.u32.totalorder %s1960_s26, %s2011_s9 }
 0x390   : > { %p1631_p11 = scmp.lt.u32.totalorder %s1629_s16, %s1625_s11  ;;  %p1633_p13 = scmp.lt.u32.totalorder %s1625_s11, %s1960_s26 }
 0x391   : > { %p1627_p8 = pnand %p1626_p7, %p1774_p5 }
 0x392   : > { %p1632_p12 = por %p1631_p11, %p1630_p10 }
 0x393   : > { %p1628_p9 = pneg %p1627_p8 }
 0x394   : > { %p1634_p0 = por %p1633_p13, %p1632_p12 }
 0x396   : > { %p1635_p1 = pnand %p1634_p0, %p1628_p9 }
 0x398   : > { %1638 = shalt.err (!%p1635_p1)
}
 0x399   : > { %1554 = dma.vmem_to_hbm [thread:$0]  (%p1774_p5), %s1962_s23, 64, %s1960_s26, %s1324_s28  }
 0x39a PF: > { %p1560_p2 = scmp.ge.s32.totalorder %s1673_s12, 2  ;;  %s1349_s21 = sand.u32 1, %s1661_s30  }
 0x39b   : > { %s1350_s25 = scalar_lea.sflag [#allocation3], %s1349_s21 }
 0x39c   : > { %p1557_p3 = pnand %p1560_p2, %p1778_p6 }
 0x39e   : > { %1656 = dma.done.wait (!%p1557_p3), %s1350_s25, 64  }
 0x39f   : > { %1658 = vsyncadd (!%p1557_p3), %s1350_s25, 4294967232  ;;  %s2017_s29 = sld [smem:[#allocation5_spill]]  ;;  %s2018_s11 = sld [smem:[#allocation6_spill]] }
 0x3a0   : > { %p19_p4 = scmp.ge.s32.totalorder %s1761_s15, 4   ;;  %s2019_s30 = smov %s1665_s10 }
 0x3a1   : > { %s2021_s12 = smov %s1761_s15 }
 0x3a2   :  { %21 = sbr.rel (!%p19_p4) target bundleno = 3 (0x3), region = 95 }
 0x3a5   : > { %s2020_s10 = smov %s2017_s29 }
 0x3a9   :  { %1355 = vsyncpa [#allocation3], 1 }
 0x3aa   :  { %1357 = vsyncpa [#allocation3 + $0x1], 1 }

</bundles_post_ra>
